<compile_context>
chip_gen: v6e
topology: v6e:2x2x1
jax: 0.10.0
libtpu: 0.0.40
codegen_flags: <defaults>
</compile_context>

<pallas_src>
import functools

import jax
import jax.numpy as jnp
from jax.experimental import pallas as pl
from jax.experimental.pallas import tpu as pltpu


def _round_up(x, m):
    return ((x + m - 1) // m) * m


def _vmem_limit_bytes():
    """Generation-aware scoped-VMEM limit (leave headroom on 64 MiB parts)."""
    try:
        cap = pltpu.get_tpu_info().vmem_capacity_bytes
    except Exception:
        return 48 * 1024 * 1024          # universally safe default
    if cap <= 64 * 1024 * 1024:          # v7x: 64 MiB physical per TensorCore
        return 48 * 1024 * 1024
    return 96 * 1024 * 1024              # v5e / v6e: 128 MiB physical


def _mlp_kernel(*refs, num_hidden_extra):
    """Full MLP forward for one row-tile of the flattened input.

    refs (num_hidden_extra > 0):
      x(TM,Din), w0(Din,Hp), b0(1,Hp)[f32], wh(L-1,Hp,Hp), bh(L-1,1,Hp)[f32],
      wo(Hp,Dout), bo(1,Dout)[f32], o(TM,Dout)
    refs (num_hidden_extra == 0): same minus wh / bh.

    SAFETY NOTE: the partial last row-tile reads garbage rows into the
    matmuls; that is correct only because those rows are masked on the output
    store.  Keep the output path a plain full-tile store.
    """
    if num_hidden_extra > 0:
        x_ref, w0_ref, b0_ref, wh_ref, bh_ref, wo_ref, bo_ref, o_ref = refs
    else:
        x_ref, w0_ref, b0_ref, wo_ref, bo_ref, o_ref = refs
        wh_ref = bh_ref = None

    w_dtype = w0_ref.dtype  # bf16 on the default perf path, f32 otherwise

    # First layer: d_in -> hidden, ReLU.  Accumulate in f32 on the MXU.
    # TODO(synk): for d_in <= 8 this could be 4 VPU broadcast-FMAs instead of
    # a narrow-K MXU push (minor win, only visible for very shallow MLPs).
    h = jnp.dot(x_ref[...].astype(w_dtype), w0_ref[...],
                preferred_element_type=jnp.float32)
    h = jnp.maximum(h + b0_ref[...], 0.0)               # bias kept in f32

    # Remaining hidden layers (statically unrolled).
    for l in range(num_hidden_extra):
        h = jnp.dot(h.astype(w_dtype), wh_ref[l],
                    preferred_element_type=jnp.float32)
        h = jnp.maximum(h + bh_ref[l], 0.0)

    # Output linear (no activation); logical (unpadded) output width.
    out = jnp.dot(h.astype(w_dtype), wo_ref[...],
                  preferred_element_type=jnp.float32)
    o_ref[...] = (out + bo_ref[...]).astype(o_ref.dtype)


def prepare_mlp_params(params, compute_dtype=jnp.bfloat16):
    """Pad/cast weights ONCE (hoisted out of the per-call forward path).

    Weights -> compute_dtype with the hidden dim zero-padded to a multiple of
    128 (lane-dense matmuls, exact math).  Biases stay f32.  The output dim is
    deliberately NOT padded: the kernel writes (M, d_out) directly.
    """
    w0, b0, wh, bh, wo, bo = params
    d_in, hidden = w0.shape
    d_out = wo.shape[1]
    num_hidden_extra = wh.shape[0]
    h_pad = _round_up(hidden, 128)

    def pad_to(a, tgt, dt):
        pads = [(0, t - s) for s, t in zip(a.shape, tgt)]
        return jnp.pad(a, pads).astype(dt)

    prepared = dict(
        d_in=d_in, hidden=hidden, h_pad=h_pad, d_out=d_out,
        num_hidden_extra=num_hidden_extra, compute_dtype=compute_dtype,
        w0=pad_to(w0, (d_in, h_pad), compute_dtype),
        b0=pad_to(b0, (1, h_pad), jnp.float32),
        wo=pad_to(wo, (h_pad, d_out), compute_dtype),
        bo=bo.astype(jnp.float32),
        wh=None, bh=None,
    )
    if num_hidden_extra > 0:
        prepared["wh"] = pad_to(wh, (num_hidden_extra, h_pad, h_pad),
                                compute_dtype)
        prepared["bh"] = pad_to(bh, (num_hidden_extra, 1, h_pad), jnp.float32)
    return prepared


def _derive_tile_m(m, d_in, h_pad, d_out, x_itemsize, c_itemsize,
                   out_itemsize, resident_bytes, vmem_limit):
    """Row-tile size from a VMEM budget instead of a fixed constant."""
    # Budget left after (conservatively double-counted) resident weights and
    # headroom for compiler-internal scratch.
    avail = max(vmem_limit - 2 * resident_bytes - (8 << 20), 4 << 20)
    # Per-row VMEM: double-buffered x tile, double-buffered out tile, plus the
    # f32 hidden activation and its compute-dtype cast (compiler scratch).
    per_row = (2 * d_in * x_itemsize + 2 * d_out * out_itemsize
               + h_pad * (4 + c_itemsize))
    tile_m = max(256, (avail // per_row) // 256 * 256)
    tile_m = min(tile_m, 4096)
    if m >= 512:
        # Keep >= 2 grid steps so both v7x TensorCores get work (harmless on
        # single-TC v5e/v6e: one extra ~0.35 us grid step).
        tile_m = min(tile_m, _round_up(pl.cdiv(m, 2), 256))
    tile_m = max(8, min(tile_m, _round_up(m, 8)))
    return tile_m


def mlp_forward(x, prepared, *, tile_m=None):
    """x: (batch, N_v, input_dim) -> (batch, N_v, output_dim)."""
    batch, n_v, d_in = x.shape
    assert d_in == prepared["d_in"]
    h_pad = prepared["h_pad"]
    hidden = prepared["hidden"]
    d_out = prepared["d_out"]
    num_hidden_extra = prepared["num_hidden_extra"]
    c_dtype = prepared["compute_dtype"]
    out_dtype = x.dtype

    m = batch * n_v
    x2 = x.reshape(m, d_in)          # cast to compute dtype happens in-kernel

    c_item = jnp.dtype(c_dtype).itemsize
    x_item = jnp.dtype(x.dtype).itemsize
    o_item = jnp.dtype(out_dtype).itemsize

    wh_size = prepared["wh"].size if prepared["wh"] is not None else 0
    bh_size = prepared["bh"].size if prepared["bh"] is not None else 0
    resident = ((prepared["w0"].size + prepared["wo"].size + wh_size) * c_item
                + (prepared["b0"].size + prepared["bo"].size + bh_size) * 4)

    vmem_limit = _vmem_limit_bytes()
    if tile_m is None:
        tile_m = _derive_tile_m(m, d_in, h_pad, d_out, x_item, c_item, o_item,
                                resident, vmem_limit)
    else:
        tile_m = max(8, min(_round_up(tile_m, 8), _round_up(m, 8)))

    grid = (pl.cdiv(m, tile_m),)

    flops = 2 * m * (d_in * hidden + num_hidden_extra * hidden * hidden
                     + hidden * d_out)
    bytes_accessed = m * d_in * x_item + m * d_out * o_item + resident

    kernel = functools.partial(_mlp_kernel, num_hidden_extra=num_hidden_extra)

    def build_in_specs(use_buffered):
        kw = {}
        if use_buffered and hasattr(pl, "Buffered"):
            kw = dict(pipeline_mode=pl.Buffered(1))   # resident: single buffer

        def res(shape, nd):
            return pl.BlockSpec(shape, (lambda *_: (0,) * nd), **kw)

        specs = [pl.BlockSpec((tile_m, d_in), lambda i: (i, 0)),   # x tile
                 res((d_in, h_pad), 2),                            # w0
                 res((1, h_pad), 2)]                               # b0 (f32)
        operands = [x2, prepared["w0"], prepared["b0"]]
        if num_hidden_extra > 0:
            specs += [res((num_hidden_extra, h_pad, h_pad), 3),    # wh
                      res((num_hidden_extra, 1, h_pad), 3)]        # bh (f32)
            operands += [prepared["wh"], prepared["bh"]]
        specs += [res((h_pad, d_out), 2),                          # wo
                  res((1, d_out), 2)]                              # bo (f32)
        operands += [prepared["wo"], prepared["bo"]]
        return specs, operands

    def run(use_buffered):
        in_specs, operands = build_in_specs(use_buffered)
        return pl.pallas_call(
            kernel,
            out_shape=jax.ShapeDtypeStruct((m, d_out), out_dtype),
            grid_spec=pltpu.PrefetchScalarGridSpec(
                num_scalar_prefetch=0,
                grid=grid,
                in_specs=in_specs,
                out_specs=pl.BlockSpec((tile_m, d_out), lambda i: (i, 0)),
            ),
            compiler_params=pltpu.CompilerParams(
                dimension_semantics=("parallel",),
                vmem_limit_bytes=vmem_limit),
            cost_estimate=pl.CostEstimate(flops=flops, transcendentals=0,
                                          bytes_accessed=bytes_accessed),
        )(*operands)

    try:
        out2 = run(use_buffered=True)
    except Exception:
        # Fallback: default double-buffering for the resident operands.
        out2 = run(use_buffered=False)

    return out2.reshape(batch, n_v, d_out)


def init_mlp_params(key, input_dim, output_dim, hidden_dim, hidden_layers,
                    dtype=jnp.float32):
    """Deterministic synthetic init matching the torch module's shapes.

    Weights are stored as (in, out) == torch Linear weight transposed.
    """
    ks = jax.random.split(key, 2 * (hidden_layers + 1))
    scale = 0.1
    w0 = scale * jax.random.normal(ks[0], (input_dim, hidden_dim), dtype)
    b0 = scale * jax.random.normal(ks[1], (1, hidden_dim), dtype)

    wh_list, bh_list = [], []
    for l in range(hidden_layers - 1):
        wh_list.append(scale * jax.random.normal(
            ks[2 + 2 * l], (hidden_dim, hidden_dim), dtype))
        bh_list.append(scale * jax.random.normal(
            ks[3 + 2 * l], (1, hidden_dim), dtype))
    if wh_list:
        wh = jnp.stack(wh_list, axis=0)                       # (L-1, H, H)
        bh = jnp.stack(bh_list, axis=0)                       # (L-1, 1, H)
    else:  # hidden_layers == 1
        wh = jnp.zeros((0, hidden_dim, hidden_dim), dtype)
        bh = jnp.zeros((0, 1, hidden_dim), dtype)

    wo = scale * jax.random.normal(ks[-2], (hidden_dim, output_dim), dtype)
    bo = scale * jax.random.normal(ks[-1], (1, output_dim), dtype)
    return (w0, b0, wh, bh, wo, bo)


def mlp_reference(x, params):
    """Pure-JAX reference of the torch forward pass."""
    w0, b0, wh, bh, wo, bo = params
    b, n_v, _ = x.shape
    h = x.reshape(b * n_v, -1)
    h = jnp.maximum(h @ w0 + b0, 0.0)
    for l in range(wh.shape[0]):
        h = jnp.maximum(h @ wh[l] + bh[l], 0.0)
    out = h @ wo + bo
    return out.reshape(b, n_v, -1)


if __name__ == "__main__":
    # Small shapes consistent with forward(input: (batch, N_v, input_dim)).
    batch, n_v = 2, 8
    input_dim, output_dim = 4, 3
    hidden_dim, hidden_layers = 32, 4

    key = jax.random.PRNGKey(0)
    k_x, k_p, k_x2 = jax.random.split(key, 3)
    x = jax.random.normal(k_x, (batch, n_v, input_dim), jnp.float32)
    params = init_mlp_params(k_p, input_dim, output_dim, hidden_dim,
                             hidden_layers)
    ref = mlp_reference(x, params)

    # 1) Default bf16 MXU path (f32 accumulation, f32 biases).
    prep_bf16 = prepare_mlp_params(params, compute_dtype=jnp.bfloat16)
    out_bf16 = jax.block_until_ready(mlp_forward(x, prep_bf16))
    assert out_bf16.shape == (batch, n_v, output_dim)
    assert jnp.allclose(out_bf16, ref, atol=5e-2, rtol=5e-2)

    # 2) f32 path (exact match to the torch semantics).  Re-uses the same
    #    prepared params across calls (padding/cast hoisted out of forward).
    prep_f32 = prepare_mlp_params(params, compute_dtype=jnp.float32)
    out_f32 = jax.block_until_ready(mlp_forward(x, prep_f32))
    assert jnp.allclose(out_f32, ref, atol=1e-5, rtol=1e-5)
    out_f32b = jax.block_until_ready(mlp_forward(x, prep_f32))
    assert jnp.allclose(out_f32b, ref, atol=1e-5, rtol=1e-5)

    # 3) Ragged M (not a multiple of the tile) + hidden_layers == 1 edge case:
    #    exercises the masked partial row block and the no-wh kernel variant.
    x_r = jax.random.normal(k_x2, (2, 50, input_dim), jnp.float32)
    params_1 = init_mlp_params(k_p, input_dim, output_dim, hidden_dim, 1)
    prep_1 = prepare_mlp_params(params_1, compute_dtype=jnp.float32)
    out_r = jax.block_until_ready(mlp_forward(x_r, prep_1))
    ref_r = mlp_reference(x_r, params_1)
    assert jnp.allclose(out_r, ref_r, atol=1e-5, rtol=1e-5)

    print("KERNEL_OK")
</pallas_src>

<mosaic_0001>
module attributes {stable_mosaic.version = 11 : i64} {
  func.func @_mlp_kernel(%arg0: i32, %arg1: memref<16x4xf32, #tpu.memory_space<vmem>>, %arg2: memref<4x128xbf16, #tpu.memory_space<vmem>>, %arg3: memref<1x128xf32, #tpu.memory_space<vmem>>, %arg4: memref<3x128x128xbf16, #tpu.memory_space<vmem>>, %arg5: memref<3x1x128xf32, #tpu.memory_space<vmem>>, %arg6: memref<128x3xbf16, #tpu.memory_space<vmem>>, %arg7: memref<1x3xf32, #tpu.memory_space<vmem>>, %arg8: memref<16x3xf32, #tpu.memory_space<vmem>>) attributes {dimension_semantics = [#tpu.dimension_semantics<parallel>], iteration_bounds = array<i64: 1>, scalar_prefetch = 0 : i64, scratch_operands = 0 : i64, tpu.core_type = #tpu.core_type<tc>, window_params = [{transform_indices = @transform_0, window_bounds = array<i64: 16, 4>}, {pipeline_mode = #tpu.pipeline_mode<synchronous>, transform_indices = @transform_1, window_bounds = array<i64: 4, 128>}, {pipeline_mode = #tpu.pipeline_mode<synchronous>, transform_indices = @transform_2, window_bounds = array<i64: 1, 128>}, {pipeline_mode = #tpu.pipeline_mode<synchronous>, transform_indices = @transform_3, window_bounds = array<i64: 3, 128, 128>}, {pipeline_mode = #tpu.pipeline_mode<synchronous>, transform_indices = @transform_4, window_bounds = array<i64: 3, 1, 128>}, {pipeline_mode = #tpu.pipeline_mode<synchronous>, transform_indices = @transform_5, window_bounds = array<i64: 128, 3>}, {pipeline_mode = #tpu.pipeline_mode<synchronous>, transform_indices = @transform_6, window_bounds = array<i64: 1, 3>}, {transform_indices = @transform_7, window_bounds = array<i64: 16, 3>}]} {
    %c0 = arith.constant 0 : index
    %c0_0 = arith.constant 0 : index
    %0 = vector.load %arg1[%c0, %c0_0] : memref<16x4xf32, #tpu.memory_space<vmem>>, vector<16x4xf32>
    %1 = arith.truncf %0 : vector<16x4xf32> to vector<16x4xbf16>
    %c0_1 = arith.constant 0 : index
    %c0_2 = arith.constant 0 : index
    %2 = vector.load %arg2[%c0_1, %c0_2] : memref<4x128xbf16, #tpu.memory_space<vmem>>, vector<4x128xbf16>
    %cst = arith.constant dense<0.000000e+00> : vector<16x128xf32>
    %3 = tpu.matmul %1, %2, %cst {dimension_numbers = #tpu.dot_dimension_numbers<[1], [0], [0], [1], [0, 0, 1, 1], [], []>} : vector<16x4xbf16>, vector<4x128xbf16>, vector<16x128xf32> -> vector<16x128xf32>
    %c0_3 = arith.constant 0 : index
    %c0_4 = arith.constant 0 : index
    %4 = vector.load %arg3[%c0_3, %c0_4] : memref<1x128xf32, #tpu.memory_space<vmem>>, vector<1x128xf32>
    %5 = vector.broadcast %4 : vector<1x128xf32> to vector<16x128xf32>
    %6 = arith.addf %3, %5 : vector<16x128xf32>
    %cst_5 = arith.constant 0.000000e+00 : f32
    %7 = vector.broadcast %cst_5 : f32 to vector<16x128xf32>
    %8 = arith.maximumf %6, %7 : vector<16x128xf32>
    %9 = arith.truncf %8 : vector<16x128xf32> to vector<16x128xbf16>
    %c0_6 = arith.constant 0 : index
    %c0_7 = arith.constant 0 : index
    %c0_8 = arith.constant 0 : index
    %10 = vector.load %arg4[%c0_6, %c0_7, %c0_8] : memref<3x128x128xbf16, #tpu.memory_space<vmem>>, vector<1x128x128xbf16>
    %11 = vector.shape_cast %10 : vector<1x128x128xbf16> to vector<128x128xbf16>
    %cst_9 = arith.constant dense<0.000000e+00> : vector<16x128xf32>
    %12 = tpu.matmul %9, %11, %cst_9 {dimension_numbers = #tpu.dot_dimension_numbers<[1], [0], [0], [1], [0, 0, 1, 1], [], []>} : vector<16x128xbf16>, vector<128x128xbf16>, vector<16x128xf32> -> vector<16x128xf32>
    %c0_10 = arith.constant 0 : index
    %c0_11 = arith.constant 0 : index
    %c0_12 = arith.constant 0 : index
    %13 = vector.load %arg5[%c0_10, %c0_11, %c0_12] : memref<3x1x128xf32, #tpu.memory_space<vmem>>, vector<1x1x128xf32>
    %14 = vector.shape_cast %13 : vector<1x1x128xf32> to vector<1x128xf32>
    %15 = vector.broadcast %14 : vector<1x128xf32> to vector<16x128xf32>
    %16 = arith.addf %12, %15 : vector<16x128xf32>
    %cst_13 = arith.constant 0.000000e+00 : f32
    %17 = vector.broadcast %cst_13 : f32 to vector<16x128xf32>
    %18 = arith.maximumf %16, %17 : vector<16x128xf32>
    %19 = arith.truncf %18 : vector<16x128xf32> to vector<16x128xbf16>
    %c1 = arith.constant 1 : index
    %c0_14 = arith.constant 0 : index
    %c0_15 = arith.constant 0 : index
    %20 = vector.load %arg4[%c1, %c0_14, %c0_15] : memref<3x128x128xbf16, #tpu.memory_space<vmem>>, vector<1x128x128xbf16>
    %21 = vector.shape_cast %20 : vector<1x128x128xbf16> to vector<128x128xbf16>
    %cst_16 = arith.constant dense<0.000000e+00> : vector<16x128xf32>
    %22 = tpu.matmul %19, %21, %cst_16 {dimension_numbers = #tpu.dot_dimension_numbers<[1], [0], [0], [1], [0, 0, 1, 1], [], []>} : vector<16x128xbf16>, vector<128x128xbf16>, vector<16x128xf32> -> vector<16x128xf32>
    %c1_17 = arith.constant 1 : index
    %c0_18 = arith.constant 0 : index
    %c0_19 = arith.constant 0 : index
    %23 = vector.load %arg5[%c1_17, %c0_18, %c0_19] : memref<3x1x128xf32, #tpu.memory_space<vmem>>, vector<1x1x128xf32>
    %24 = vector.shape_cast %23 : vector<1x1x128xf32> to vector<1x128xf32>
    %25 = vector.broadcast %24 : vector<1x128xf32> to vector<16x128xf32>
    %26 = arith.addf %22, %25 : vector<16x128xf32>
    %cst_20 = arith.constant 0.000000e+00 : f32
    %27 = vector.broadcast %cst_20 : f32 to vector<16x128xf32>
    %28 = arith.maximumf %26, %27 : vector<16x128xf32>
    %29 = arith.truncf %28 : vector<16x128xf32> to vector<16x128xbf16>
    %c2 = arith.constant 2 : index
    %c0_21 = arith.constant 0 : index
    %c0_22 = arith.constant 0 : index
    %30 = vector.load %arg4[%c2, %c0_21, %c0_22] : memref<3x128x128xbf16, #tpu.memory_space<vmem>>, vector<1x128x128xbf16>
    %31 = vector.shape_cast %30 : vector<1x128x128xbf16> to vector<128x128xbf16>
    %cst_23 = arith.constant dense<0.000000e+00> : vector<16x128xf32>
    %32 = tpu.matmul %29, %31, %cst_23 {dimension_numbers = #tpu.dot_dimension_numbers<[1], [0], [0], [1], [0, 0, 1, 1], [], []>} : vector<16x128xbf16>, vector<128x128xbf16>, vector<16x128xf32> -> vector<16x128xf32>
    %c2_24 = arith.constant 2 : index
    %c0_25 = arith.constant 0 : index
    %c0_26 = arith.constant 0 : index
    %33 = vector.load %arg5[%c2_24, %c0_25, %c0_26] : memref<3x1x128xf32, #tpu.memory_space<vmem>>, vector<1x1x128xf32>
    %34 = vector.shape_cast %33 : vector<1x1x128xf32> to vector<1x128xf32>
    %35 = vector.broadcast %34 : vector<1x128xf32> to vector<16x128xf32>
    %36 = arith.addf %32, %35 : vector<16x128xf32>
    %cst_27 = arith.constant 0.000000e+00 : f32
    %37 = vector.broadcast %cst_27 : f32 to vector<16x128xf32>
    %38 = arith.maximumf %36, %37 : vector<16x128xf32>
    %39 = arith.truncf %38 : vector<16x128xf32> to vector<16x128xbf16>
    %c0_28 = arith.constant 0 : index
    %c0_29 = arith.constant 0 : index
    %40 = vector.load %arg6[%c0_28, %c0_29] : memref<128x3xbf16, #tpu.memory_space<vmem>>, vector<128x3xbf16>
    %cst_30 = arith.constant dense<0.000000e+00> : vector<16x3xf32>
    %41 = tpu.matmul %39, %40, %cst_30 {dimension_numbers = #tpu.dot_dimension_numbers<[1], [0], [0], [1], [0, 0, 1, 1], [], []>} : vector<16x128xbf16>, vector<128x3xbf16>, vector<16x3xf32> -> vector<16x3xf32>
    %c0_31 = arith.constant 0 : index
    %c0_32 = arith.constant 0 : index
    %42 = vector.load %arg7[%c0_31, %c0_32] : memref<1x3xf32, #tpu.memory_space<vmem>>, vector<1x3xf32>
    %43 = vector.broadcast %42 : vector<1x3xf32> to vector<16x3xf32>
    %44 = arith.addf %41, %43 : vector<16x3xf32>
    %c0_33 = arith.constant 0 : index
    %c0_34 = arith.constant 0 : index
    %45 = vector.load %arg8[%c0_33, %c0_34] : memref<16x3xf32, #tpu.memory_space<vmem>>, vector<16x3xf32>
    tpu.vector_store %arg8[%c0_33, %c0_34], %44 {strides = array<i32>} : memref<16x3xf32, #tpu.memory_space<vmem>>, vector<16x3xf32>,
    return
  }
  func.func @transform_0(%arg0: i32) -> (i32, i32) {
    %c0_i32 = arith.constant 0 : i32
    %c0_i32_0 = arith.constant 0 : i32
    return %arg0, %c0_i32 : i32, i32
  }
  func.func @transform_1(%arg0: i32) -> (i32, i32) {
    %c0_i32 = arith.constant 0 : i32
    %c0_i32_0 = arith.constant 0 : i32
    %c0_i32_1 = arith.constant 0 : i32
    return %c0_i32, %c0_i32_0 : i32, i32
  }
  func.func @transform_2(%arg0: i32) -> (i32, i32) {
    %c0_i32 = arith.constant 0 : i32
    %c0_i32_0 = arith.constant 0 : i32
    %c0_i32_1 = arith.constant 0 : i32
    return %c0_i32, %c0_i32_0 : i32, i32
  }
  func.func @transform_3(%arg0: i32) -> (i32, i32, i32) {
    %c0_i32 = arith.constant 0 : i32
    %c0_i32_0 = arith.constant 0 : i32
    %c0_i32_1 = arith.constant 0 : i32
    %c0_i32_2 = arith.constant 0 : i32
    return %c0_i32, %c0_i32_0, %c0_i32_1 : i32, i32, i32
  }
  func.func @transform_4(%arg0: i32) -> (i32, i32, i32) {
    %c0_i32 = arith.constant 0 : i32
    %c0_i32_0 = arith.constant 0 : i32
    %c0_i32_1 = arith.constant 0 : i32
    %c0_i32_2 = arith.constant 0 : i32
    return %c0_i32, %c0_i32_0, %c0_i32_1 : i32, i32, i32
  }
  func.func @transform_5(%arg0: i32) -> (i32, i32) {
    %c0_i32 = arith.constant 0 : i32
    %c0_i32_0 = arith.constant 0 : i32
    %c0_i32_1 = arith.constant 0 : i32
    return %c0_i32, %c0_i32_0 : i32, i32
  }
  func.func @transform_6(%arg0: i32) -> (i32, i32) {
    %c0_i32 = arith.constant 0 : i32
    %c0_i32_0 = arith.constant 0 : i32
    %c0_i32_1 = arith.constant 0 : i32
    return %c0_i32, %c0_i32_0 : i32, i32
  }
  func.func @transform_7(%arg0: i32) -> (i32, i32) {
    %c0_i32 = arith.constant 0 : i32
    %c0_i32_0 = arith.constant 0 : i32
    return %arg0, %c0_i32 : i32, i32
  }
}

module attributes {stable_mosaic.version = 11 : i64} {
  func.func @_mlp_kernel(%arg0: i32, %arg1: memref<16x4xf32, #tpu.memory_space<vmem>>, %arg2: memref<4x128xbf16, #tpu.memory_space<vmem>>, %arg3: memref<1x128xf32, #tpu.memory_space<vmem>>, %arg4: memref<3x128x128xbf16, #tpu.memory_space<vmem>>, %arg5: memref<3x1x128xf32, #tpu.memory_space<vmem>>, %arg6: memref<128x3xbf16, #tpu.memory_space<vmem>>, %arg7: memref<1x3xf32, #tpu.memory_space<vmem>>, %arg8: memref<16x3xf32, #tpu.memory_space<vmem>>) attributes {dimension_semantics = [#tpu.dimension_semantics<parallel>], iteration_bounds = array<i64: 1>, scalar_prefetch = 0 : i64, scratch_operands = 0 : i64, tpu.core_type = #tpu.core_type<tc>, window_params = [{transform_indices = @transform_0, window_bounds = array<i64: 16, 4>}, {pipeline_mode = #tpu.pipeline_mode<synchronous>, transform_indices = @transform_1, window_bounds = array<i64: 4, 128>}, {pipeline_mode = #tpu.pipeline_mode<synchronous>, transform_indices = @transform_2, window_bounds = array<i64: 1, 128>}, {pipeline_mode = #tpu.pipeline_mode<synchronous>, transform_indices = @transform_3, window_bounds = array<i64: 3, 128, 128>}, {pipeline_mode = #tpu.pipeline_mode<synchronous>, transform_indices = @transform_4, window_bounds = array<i64: 3, 1, 128>}, {pipeline_mode = #tpu.pipeline_mode<synchronous>, transform_indices = @transform_5, window_bounds = array<i64: 128, 3>}, {pipeline_mode = #tpu.pipeline_mode<synchronous>, transform_indices = @transform_6, window_bounds = array<i64: 1, 3>}, {transform_indices = @transform_7, window_bounds = array<i64: 16, 3>}]} {
    %c0 = arith.constant 0 : index
    %c0_0 = arith.constant 0 : index
    %0 = vector.load %arg1[%c0, %c0_0] : memref<16x4xf32, #tpu.memory_space<vmem>>, vector<16x4xf32>
    %1 = arith.truncf %0 : vector<16x4xf32> to vector<16x4xbf16>
    %c0_1 = arith.constant 0 : index
    %c0_2 = arith.constant 0 : index
    %2 = vector.load %arg2[%c0_1, %c0_2] : memref<4x128xbf16, #tpu.memory_space<vmem>>, vector<4x128xbf16>
    %cst = arith.constant dense<0.000000e+00> : vector<16x128xf32>
    %3 = tpu.matmul %1, %2, %cst {dimension_numbers = #tpu.dot_dimension_numbers<[1], [0], [0], [1], [0, 0, 1, 1], [], []>} : vector<16x4xbf16>, vector<4x128xbf16>, vector<16x128xf32> -> vector<16x128xf32>
    %c0_3 = arith.constant 0 : index
    %c0_4 = arith.constant 0 : index
    %4 = vector.load %arg3[%c0_3, %c0_4] : memref<1x128xf32, #tpu.memory_space<vmem>>, vector<1x128xf32>
    %5 = vector.broadcast %4 : vector<1x128xf32> to vector<16x128xf32>
    %6 = arith.addf %3, %5 : vector<16x128xf32>
    %cst_5 = arith.constant 0.000000e+00 : f32
    %7 = vector.broadcast %cst_5 : f32 to vector<16x128xf32>
    %8 = arith.maximumf %6, %7 : vector<16x128xf32>
    %9 = arith.truncf %8 : vector<16x128xf32> to vector<16x128xbf16>
    %c0_6 = arith.constant 0 : index
    %c0_7 = arith.constant 0 : index
    %c0_8 = arith.constant 0 : index
    %10 = vector.load %arg4[%c0_6, %c0_7, %c0_8] : memref<3x128x128xbf16, #tpu.memory_space<vmem>>, vector<1x128x128xbf16>
    %11 = vector.shape_cast %10 : vector<1x128x128xbf16> to vector<128x128xbf16>
    %cst_9 = arith.constant dense<0.000000e+00> : vector<16x128xf32>
    %12 = tpu.matmul %9, %11, %cst_9 {dimension_numbers = #tpu.dot_dimension_numbers<[1], [0], [0], [1], [0, 0, 1, 1], [], []>} : vector<16x128xbf16>, vector<128x128xbf16>, vector<16x128xf32> -> vector<16x128xf32>
    %c0_10 = arith.constant 0 : index
    %c0_11 = arith.constant 0 : index
    %c0_12 = arith.constant 0 : index
    %13 = vector.load %arg5[%c0_10, %c0_11, %c0_12] : memref<3x1x128xf32, #tpu.memory_space<vmem>>, vector<1x1x128xf32>
    %14 = vector.shape_cast %13 : vector<1x1x128xf32> to vector<1x128xf32>
    %15 = vector.broadcast %14 : vector<1x128xf32> to vector<16x128xf32>
    %16 = arith.addf %12, %15 : vector<16x128xf32>
    %cst_13 = arith.constant 0.000000e+00 : f32
    %17 = vector.broadcast %cst_13 : f32 to vector<16x128xf32>
    %18 = arith.maximumf %16, %17 : vector<16x128xf32>
    %19 = arith.truncf %18 : vector<16x128xf32> to vector<16x128xbf16>
    %c1 = arith.constant 1 : index
    %c0_14 = arith.constant 0 : index
    %c0_15 = arith.constant 0 : index
    %20 = vector.load %arg4[%c1, %c0_14, %c0_15] : memref<3x128x128xbf16, #tpu.memory_space<vmem>>, vector<1x128x128xbf16>
    %21 = vector.shape_cast %20 : vector<1x128x128xbf16> to vector<128x128xbf16>
    %cst_16 = arith.constant dense<0.000000e+00> : vector<16x128xf32>
    %22 = tpu.matmul %19, %21, %cst_16 {dimension_numbers = #tpu.dot_dimension_numbers<[1], [0], [0], [1], [0, 0, 1, 1], [], []>} : vector<16x128xbf16>, vector<128x128xbf16>, vector<16x128xf32> -> vector<16x128xf32>
    %c1_17 = arith.constant 1 : index
    %c0_18 = arith.constant 0 : index
    %c0_19 = arith.constant 0 : index
    %23 = vector.load %arg5[%c1_17, %c0_18, %c0_19] : memref<3x1x128xf32, #tpu.memory_space<vmem>>, vector<1x1x128xf32>
    %24 = vector.shape_cast %23 : vector<1x1x128xf32> to vector<1x128xf32>
    %25 = vector.broadcast %24 : vector<1x128xf32> to vector<16x128xf32>
    %26 = arith.addf %22, %25 : vector<16x128xf32>
    %cst_20 = arith.constant 0.000000e+00 : f32
    %27 = vector.broadcast %cst_20 : f32 to vector<16x128xf32>
    %28 = arith.maximumf %26, %27 : vector<16x128xf32>
    %29 = arith.truncf %28 : vector<16x128xf32> to vector<16x128xbf16>
    %c2 = arith.constant 2 : index
    %c0_21 = arith.constant 0 : index
    %c0_22 = arith.constant 0 : index
    %30 = vector.load %arg4[%c2, %c0_21, %c0_22] : memref<3x128x128xbf16, #tpu.memory_space<vmem>>, vector<1x128x128xbf16>
    %31 = vector.shape_cast %30 : vector<1x128x128xbf16> to vector<128x128xbf16>
    %cst_23 = arith.constant dense<0.000000e+00> : vector<16x128xf32>
    %32 = tpu.matmul %29, %31, %cst_23 {dimension_numbers = #tpu.dot_dimension_numbers<[1], [0], [0], [1], [0, 0, 1, 1], [], []>} : vector<16x128xbf16>, vector<128x128xbf16>, vector<16x128xf32> -> vector<16x128xf32>
    %c2_24 = arith.constant 2 : index
    %c0_25 = arith.constant 0 : index
    %c0_26 = arith.constant 0 : index
    %33 = vector.load %arg5[%c2_24, %c0_25, %c0_26] : memref<3x1x128xf32, #tpu.memory_space<vmem>>, vector<1x1x128xf32>
    %34 = vector.shape_cast %33 : vector<1x1x128xf32> to vector<1x128xf32>
    %35 = vector.broadcast %34 : vector<1x128xf32> to vector<16x128xf32>
    %36 = arith.addf %32, %35 : vector<16x128xf32>
    %cst_27 = arith.constant 0.000000e+00 : f32
    %37 = vector.broadcast %cst_27 : f32 to vector<16x128xf32>
    %38 = arith.maximumf %36, %37 : vector<16x128xf32>
    %39 = arith.truncf %38 : vector<16x128xf32> to vector<16x128xbf16>
    %c0_28 = arith.constant 0 : index
    %c0_29 = arith.constant 0 : index
    %40 = vector.load %arg6[%c0_28, %c0_29] : memref<128x3xbf16, #tpu.memory_space<vmem>>, vector<128x3xbf16>
    %cst_30 = arith.constant dense<0.000000e+00> : vector<16x3xf32>
    %41 = tpu.matmul %39, %40, %cst_30 {dimension_numbers = #tpu.dot_dimension_numbers<[1], [0], [0], [1], [0, 0, 1, 1], [], []>} : vector<16x128xbf16>, vector<128x3xbf16>, vector<16x3xf32> -> vector<16x3xf32>
    %c0_31 = arith.constant 0 : index
    %c0_32 = arith.constant 0 : index
    %42 = vector.load %arg7[%c0_31, %c0_32] : memref<1x3xf32, #tpu.memory_space<vmem>>, vector<1x3xf32>
    %43 = vector.broadcast %42 : vector<1x3xf32> to vector<16x3xf32>
    %44 = arith.addf %41, %43 : vector<16x3xf32>
    %c0_33 = arith.constant 0 : index
    %c0_34 = arith.constant 0 : index
    %45 = vector.load %arg8[%c0_33, %c0_34] : memref<16x3xf32, #tpu.memory_space<vmem>>, vector<16x3xf32>
    tpu.vector_store %arg8[%c0_33, %c0_34], %44 {strides = array<i32>} : memref<16x3xf32, #tpu.memory_space<vmem>>, vector<16x3xf32>,
    return
  }
  func.func @transform_0(%arg0: i32) -> (i32, i32) {
    %c0_i32 = arith.constant 0 : i32
    %c0_i32_0 = arith.constant 0 : i32
    return %arg0, %c0_i32 : i32, i32
  }
  func.func @transform_1(%arg0: i32) -> (i32, i32) {
    %c0_i32 = arith.constant 0 : i32
    %c0_i32_0 = arith.constant 0 : i32
    %c0_i32_1 = arith.constant 0 : i32
    return %c0_i32, %c0_i32_0 : i32, i32
  }
  func.func @transform_2(%arg0: i32) -> (i32, i32) {
    %c0_i32 = arith.constant 0 : i32
    %c0_i32_0 = arith.constant 0 : i32
    %c0_i32_1 = arith.constant 0 : i32
    return %c0_i32, %c0_i32_0 : i32, i32
  }
  func.func @transform_3(%arg0: i32) -> (i32, i32, i32) {
    %c0_i32 = arith.constant 0 : i32
    %c0_i32_0 = arith.constant 0 : i32
    %c0_i32_1 = arith.constant 0 : i32
    %c0_i32_2 = arith.constant 0 : i32
    return %c0_i32, %c0_i32_0, %c0_i32_1 : i32, i32, i32
  }
  func.func @transform_4(%arg0: i32) -> (i32, i32, i32) {
    %c0_i32 = arith.constant 0 : i32
    %c0_i32_0 = arith.constant 0 : i32
    %c0_i32_1 = arith.constant 0 : i32
    %c0_i32_2 = arith.constant 0 : i32
    return %c0_i32, %c0_i32_0, %c0_i32_1 : i32, i32, i32
  }
  func.func @transform_5(%arg0: i32) -> (i32, i32) {
    %c0_i32 = arith.constant 0 : i32
    %c0_i32_0 = arith.constant 0 : i32
    %c0_i32_1 = arith.constant 0 : i32
    return %c0_i32, %c0_i32_0 : i32, i32
  }
  func.func @transform_6(%arg0: i32) -> (i32, i32) {
    %c0_i32 = arith.constant 0 : i32
    %c0_i32_0 = arith.constant 0 : i32
    %c0_i32_1 = arith.constant 0 : i32
    return %c0_i32, %c0_i32_0 : i32, i32
  }
  func.func @transform_7(%arg0: i32) -> (i32, i32) {
    %c0_i32 = arith.constant 0 : i32
    %c0_i32_0 = arith.constant 0 : i32
    return %arg0, %c0_i32 : i32, i32
  }
}

</mosaic_0001>

<bundles_post_ra>
// kernel: tpu_custom_call.1
= control target key start
LH: loop header
LB: loop body
LE: loop exit
PB: predicated region body
PF: predicated region fallthrough
CT: control target
= control target key end

     0   :  { %12 = vsyncpa [#allocation3], 0  ;;  %s796_s24 = smov [#allocation2]   ;;  %s941_s0 = inlined_call_operand.vmem [shape: f32[16,4], index: 0, kind: input, shape index: {}]   ;;  %s942_s1 = inlined_call_operand.vmem [shape: bf16[4,128], index: 1, kind: input, shape index: {}]   ;;  %s943_s2 = inlined_call_operand.vmem [shape: f32[1,128], index: 2, kind: input, shape index: {}]   ;;  %s944_s3 = inlined_call_operand.hbm [shape: bf16[3,128,128], index: 3, kind: input, shape index: {}]   ;;  %s945_s4 = inlined_call_operand.vmem [shape: f32[3,1,128], index: 4, kind: input, shape index: {}]   ;;  %s946_s5 = inlined_call_operand.vmem [shape: bf16[128,3], index: 5, kind: input, shape index: {}]   ;;  %s947_s6 = inlined_call_operand.vmem [shape: f32[1,3], index: 6, kind: input, shape index: {}]   ;;  %s948_s7 = inlined_call_operand.vmem [shape: f32[16,3], index: 7, kind: output, shape index: {}]  }
   0x1   :  { %s24_s25 = sshll.u32 %s796_s24, 4  ;;  %s25_s25 = int_to_ptr.vmem [resolvable:$true] %s24_s25 }
   0x2   :  { %s782_s26 = scalar_lea.vmem %s25_s25, 3072  ;;  %p787_p1 = scmp.lt.s32.totalorder %s25_s25, %s25_s25 }
   0x3   :  { %p783_p0 = scmp.ne.s32.totalorder %s25_s25, %s782_s26  ;;  %p788_p2 = scmp.lt.s32.totalorder %s782_s26, %s782_s26 }
   0x5   :  { %p789_p3 = por %p788_p2, %p787_p1 }
   0x7   :  { %p790_p4 = pnand %p789_p3, %p783_p0 }
   0x9   :  { %793 = shalt.err (!%p790_p4)
}
   0xa   :  { %s797_s27 = smov 64   ;;  %s798_s28 = smov 4  }
   0xb   :  { %30 = dma.hbm_to_vmem [thread:$0]  %s944_s3, 3072, %s25_s25, [#allocation3], %s797_s27, %s797_s27, %s798_s28  }
   0xc   :  { %794 = dma.done.wait [#allocation3], 3072  }
   0xd   :  { %795 = vsyncadd [#allocation3], 4294964224  ;;  %v799_v0 = vmov 0.0   ;;  %vm800_vm0 = vmmov 0   ;;  %vm56_vm1 = vcmask 1041408   ;;  %v41_v2 = vld [vmem:[%s941_s0] sm:$0xff] }
   0xe   :  { %651 = vmatprep.subr.bf16.mxu0 %v799_v0  ;;  %653 = vmatprep.mubr.msk.bf16.mxu0 %vm800_vm0, %v799_v0  ;;  %v44_v1 = vld [vmem:[%s942_s1] sm:$0x3]  ;;  %v42_v3 = vld [vmem:[%s941_s0 + $0x8] sm:$0xff]  ;;  %v742_v6 = vld [vmem:[#allocation2 + $0x38] sm:$0xff]   ;;  %vm52_vm2 = vcmask 31744   ;;  %vm565_vm3 = vcmask 23552  }
   0xf   :  { %657 = vmatprep.subr.bf16.mxu1 %v799_v0  ;;  %673 = vmatprep.mubr.msk.bf16.mxu1 %vm800_vm0, %v799_v0  ;;  %v58_v4 = vsel %vm56_vm1, %v44_v1, 0  ;;  %v43_v5 = vpack.c.bf16 %v42_v3, %v41_v2  ;;  %v743_v7 = vld [vmem:[#allocation2 + $0x30] sm:$0xff]   ;;  %v744_v8 = vld [vmem:[#allocation2 + $0x28] sm:$0xff]   ;;  %v745_v9 = vld [vmem:[#allocation2 + $0x20] sm:$0xff]  }
  0x10   :  { %652 = vmatpush3.bf16.msra.mxu0 %v58_v4  ;;  %658 = vmatpush3.bf16.msra.mxu1 %v742_v6  ;;  %v746_v10 = vld [vmem:[#allocation2 + $0x18] sm:$0xff]   ;;  %v747_v11 = vld [vmem:[#allocation2 + $0x10] sm:$0xff]   ;;  %v748_v12 = vld [vmem:[#allocation2 + $0x8] sm:$0xff]  }
  0x11   :  { %677 = vmatprep.subr.bf16.mxu0 %v799_v0  ;;  %659 = vmatprep.subr.bf16.mxu1 %v799_v0  ;;  %v749_v13 = vld [vmem:[#allocation2] sm:$0xff]   ;;  %v750_v14 = vld [vmem:[#allocation2 + $0x78] sm:$0xff]   ;;  %v751_v15 = vld [vmem:[#allocation2 + $0x70] sm:$0xff]  }
  0x12   :  { %v752_v16 = vld [vmem:[#allocation2 + $0x68] sm:$0xff]   ;;  %v753_v17 = vld [vmem:[#allocation2 + $0x60] sm:$0xff]   ;;  %v754_v18 = vld [vmem:[#allocation2 + $0x58] sm:$0xff]  }
  0x13   :  { %654 = vmatmul.mubr.msk.bf16.vlgmr.msra.gmra.mxu0 %vm52_vm2, %v43_v5  ;;  %v573_v19 = vld [vmem:[%s943_s2] ss:$0 sm:$0xff]  ;;  %v755_v29 = vld [vmem:[#allocation2 + $0x50] sm:$0xff]   ;;  %v756_v30 = vld [vmem:[#allocation2 + $0x48] sm:$0xff]  }
  0x14   :  { %693 = vmatprep.mubr.msk.bf16.mxu0 %vm800_vm0, %v799_v0  ;;  %660 = vmatpush3.bf16.msra.mxu1 %v743_v7  ;;  %v757_v31 = vld [vmem:[#allocation2 + $0x40] sm:$0xff]   ;;  %v758_v32 = vld [vmem:[#allocation2 + $0xb8] sm:$0xff]   ;;  %v759_v33 = vld [vmem:[#allocation2 + $0xb0] sm:$0xff]  }
  0x15   :  { %661 = vmatprep.subr.bf16.mxu1 %v799_v0  ;;  %678 = vmatpush3.bf16.msra.mxu0 %v750_v14  ;;  %v760_v34 = vld [vmem:[#allocation2 + $0xa8] sm:$0xff]   ;;  %v761_v35 = vld [vmem:[#allocation2 + $0xa0] sm:$0xff]   ;;  %v762_v36 = vld [vmem:[#allocation2 + $0x98] sm:$0xff]  }
  0x16   :  { %679 = vmatprep.subr.bf16.mxu0 %v799_v0  ;;  %v575_v37 = vld [vmem:[%s945_s4] ss:$0 sm:$0xff]  ;;  %v763_v47 = vld [vmem:[#allocation2 + $0x90] sm:$0xff]   ;;  %v764_v48 = vld [vmem:[#allocation2 + $0x88] sm:$0xff]  }
  0x17   :  { %v765_v49 = vld [vmem:[#allocation2 + $0x80] sm:$0xff]   ;;  %v766_v50 = vld [vmem:[%s946_s5 + $0x38] sm:$0xff]   ;;  %v767_v51 = vld [vmem:[%s946_s5 + $0x30] sm:$0xff]  }
  0x18   :  { %662 = vmatpush3.bf16.msra.mxu1 %v744_v8  ;;  %v768_v52 = vld [vmem:[%s946_s5 + $0x28] sm:$0xff]   ;;  %v769_v53 = vld [vmem:[%s946_s5 + $0x20] sm:$0xff]   ;;  %v770_v54 = vld [vmem:[%s946_s5 + $0x18] sm:$0xff]  }
  0x19   :  { %663 = vmatprep.subr.bf16.mxu1 %v799_v0  ;;  %680 = vmatpush3.bf16.msra.mxu0 %v751_v15  ;;  %v585_v55 = vld [vmem:[%s945_s4 + $0x1] ss:$0 sm:$0xff]  ;;  %v771_v2 = vld [vmem:[%s946_s5 + $0x10] sm:$0xff]   ;;  %v772_v3 = vld [vmem:[%s946_s5 + $0x8] sm:$0xff]  }
  0x1a   :  { %681 = vmatprep.subr.bf16.mxu0 %v799_v0  ;;  %v773_v4 = vld [vmem:[%s946_s5] sm:$0xff]  }
  0x1b   :  { %v595_v5 = vld [vmem:[%s945_s4 + $0x2] ss:$0 sm:$0xff] }
  0x1c   :  { %664 = vmatpush3.bf16.msra.mxu1 %v745_v9 }
  0x1d   :  { %665 = vmatprep.subr.bf16.mxu1 %v799_v0  ;;  %682 = vmatpush3.bf16.msra.mxu0 %v752_v16 }
  0x1e   :  { %683 = vmatprep.subr.bf16.mxu0 %v799_v0 }
  0x20   :  { %666 = vmatpush3.bf16.msra.mxu1 %v746_v10 }
  0x21   :  { %667 = vmatprep.subr.bf16.mxu1 %v799_v0  ;;  %684 = vmatpush3.bf16.msra.mxu0 %v753_v17 }
  0x22   :  { %685 = vmatprep.subr.bf16.mxu0 %v799_v0 }
  0x24   :  { %668 = vmatpush3.bf16.msra.mxu1 %v747_v11 }
  0x25   :  { %669 = vmatprep.subr.bf16.mxu1 %v799_v0  ;;  %686 = vmatpush3.bf16.msra.mxu0 %v754_v18 }
  0x26   :  { %687 = vmatprep.subr.bf16.mxu0 %v799_v0 }
  0x28   :  { %670 = vmatpush3.bf16.msra.mxu1 %v748_v12 }
  0x29   :  { %671 = vmatprep.subr.bf16.mxu1 %v799_v0  ;;  %688 = vmatpush3.bf16.msra.mxu0 %v755_v29 }
  0x2a   :  { %689 = vmatprep.subr.bf16.mxu0 %v799_v0 }
  0x2c   :  { %672 = vmatpush3.bf16.msra.mxu1 %v749_v13 }
  0x2d   :  { %697 = vmatprep.subr.bf16.mxu1 %v799_v0  ;;  %690 = vmatpush3.bf16.msra.mxu0 %v756_v30 }
  0x2e   :  { %691 = vmatprep.subr.bf16.mxu0 %v799_v0 }
  0x31   :  { %692 = vmatpush3.bf16.msra.mxu0 %v757_v31 }
  0x32   :  { %717 = vmatprep.subr.bf16.mxu0 %v799_v0 }
  0xd3   :  { %v94_v20 = vpop.f32.mrf.mxu0 }
  0xd4   :  { %v95_v22 = vadd.f32 %v573_v19, %v94_v20 }
  0xd5   :  { %v655_v21 = vpop.f32.mrf.mxu0 }
  0xd6   :  { %v101_v26 = vmax.f32 %v95_v22, 0.0 }
  0xd7   :  { %v97_v23 = vpop.f32.mrf.mxu0 }
  0xd8   :  { %v98_v24 = vadd.f32 %v573_v19, %v97_v23 }
  0xd9   :  { %v656_v25 = vpop.f32.mrf.mxu0 }
  0xda   :  { %v102_v27 = vmax.f32 %v98_v24, 0.0 }
  0xdc   :  { %v103_v28 = vpack.c.bf16 %v102_v27, %v101_v26 }
  0xde   :  { %674 = vmatmul.mubr.bf16.vlgmr.msra.gmra.mxu1 %v103_v28 }
  0xdf   :  { %713 = vmatprep.mubr.msk.bf16.mxu1 %vm800_vm0, %v799_v0  ;;  %698 = vmatpush3.bf16.msra.mxu1 %v758_v32 }
  0xe0   :  { %699 = vmatprep.subr.bf16.mxu1 %v799_v0 }
  0xe3   :  { %700 = vmatpush3.bf16.msra.mxu1 %v759_v33 }
  0xe4   :  { %701 = vmatprep.subr.bf16.mxu1 %v799_v0 }
  0xe7   :  { %702 = vmatpush3.bf16.msra.mxu1 %v760_v34 }
  0xe8   :  { %703 = vmatprep.subr.bf16.mxu1 %v799_v0 }
  0xeb   :  { %704 = vmatpush3.bf16.msra.mxu1 %v761_v35 }
  0xec   :  { %705 = vmatprep.subr.bf16.mxu1 %v799_v0 }
  0xef   :  { %706 = vmatpush3.bf16.msra.mxu1 %v762_v36 }
  0xf0   :  { %707 = vmatprep.subr.bf16.mxu1 %v799_v0 }
  0xf3   :  { %708 = vmatpush3.bf16.msra.mxu1 %v763_v47 }
  0xf4   :  { %709 = vmatprep.subr.bf16.mxu1 %v799_v0 }
  0xf7   :  { %710 = vmatpush3.bf16.msra.mxu1 %v764_v48 }
  0xf8   :  { %711 = vmatprep.subr.bf16.mxu1 %v799_v0 }
  0xfb   :  { %712 = vmatpush3.bf16.msra.mxu1 %v765_v49 }
 0x19e   :  { %v209_v38 = vpop.f32.mrf.mxu1 }
 0x19f   :  { %v210_v40 = vadd.f32 %v575_v37, %v209_v38 }
 0x1a0   :  { %v675_v39 = vpop.f32.mrf.mxu1 }
 0x1a1   :  { %v216_v44 = vmax.f32 %v210_v40, 0.0 }
 0x1a2   :  { %v212_v41 = vpop.f32.mrf.mxu1 }
 0x1a3   :  { %v213_v42 = vadd.f32 %v575_v37, %v212_v41 }
 0x1a4   :  { %v676_v43 = vpop.f32.mrf.mxu1 }
 0x1a5   :  { %v217_v45 = vmax.f32 %v213_v42, 0.0 }
 0x1a7   :  { %v218_v46 = vpack.c.bf16 %v217_v45, %v216_v44 }
 0x1a9   :  { %694 = vmatmul.mubr.bf16.vlgmr.msra.gmra.mxu0 %v218_v46 }
 0x1aa   :  { %733 = vmatprep.mubr.msk.bf16.mxu0 %vm800_vm0, %v799_v0  ;;  %718 = vmatpush3.bf16.msra.mxu0 %v766_v50 }
 0x1ab   :  { %719 = vmatprep.subr.bf16.mxu0 %v799_v0 }
 0x1ae   :  { %720 = vmatpush3.bf16.msra.mxu0 %v767_v51 }
 0x1af   :  { %721 = vmatprep.subr.bf16.mxu0 %v799_v0 }
 0x1b2   :  { %722 = vmatpush3.bf16.msra.mxu0 %v768_v52 }
 0x1b3   :  { %723 = vmatprep.subr.bf16.mxu0 %v799_v0 }
 0x1b6   :  { %724 = vmatpush3.bf16.msra.mxu0 %v769_v53 }
 0x1b7   :  { %725 = vmatprep.subr.bf16.mxu0 %v799_v0 }
 0x1ba   :  { %726 = vmatpush3.bf16.msra.mxu0 %v770_v54 }
 0x1bb   :  { %727 = vmatprep.subr.bf16.mxu0 %v799_v0 }
 0x1be   :  { %728 = vmatpush3.bf16.msra.mxu0 %v771_v2 }
 0x1bf   :  { %729 = vmatprep.subr.bf16.mxu0 %v799_v0 }
 0x1c2   :  { %730 = vmatpush3.bf16.msra.mxu0 %v772_v3 }
 0x1c3   :  { %731 = vmatprep.subr.bf16.mxu0 %v799_v0  ;;  %v604_v0 = vld [vmem:[%s947_s6] ss:$0 sm:$0xff] }
 0x1c6   :  { %732 = vmatpush3.bf16.msra.mxu0 %v773_v4 }
 0x269   :  { %v326_v56 = vpop.f32.mrf.mxu0 }
 0x26a   :  { %v327_v58 = vadd.f32 %v585_v55, %v326_v56 }
 0x26b   :  { %v695_v57 = vpop.f32.mrf.mxu0 }
 0x26c   :  { %v333_v62 = vmax.f32 %v327_v58, 0.0 }
 0x26d   :  { %v329_v59 = vpop.f32.mrf.mxu0 }
 0x26e   :  { %v330_v60 = vadd.f32 %v585_v55, %v329_v59 }
 0x26f   :  { %v696_v61 = vpop.f32.mrf.mxu0 }
 0x270   :  { %v334_v63 = vmax.f32 %v330_v60, 0.0 }
 0x272   :  { %v335_v1 = vpack.c.bf16 %v334_v63, %v333_v62 }
 0x274   :  { %714 = vmatmul.mubr.bf16.vlgmr.msra.gmra.mxu1 %v335_v1 }
 0x334   :  { %v443_v6 = vpop.f32.mrf.mxu1 }
 0x335   :  { %v444_v8 = vadd.f32 %v595_v5, %v443_v6 }
 0x336   :  { %v715_v7 = vpop.f32.mrf.mxu1 }
 0x337   :  { %v450_v12 = vmax.f32 %v444_v8, 0.0 }
 0x338   :  { %v446_v9 = vpop.f32.mrf.mxu1 }
 0x339   :  { %v447_v10 = vadd.f32 %v595_v5, %v446_v9 }
 0x33a   :  { %v716_v11 = vpop.f32.mrf.mxu1 }
 0x33b   :  { %v451_v13 = vmax.f32 %v447_v10, 0.0 }
 0x33d   :  { %v452_v14 = vpack.c.bf16 %v451_v13, %v450_v12 }
 0x33f   :  { %734 = vmatmul.mubr.bf16.vlgmr.msra.gmra.mxu0 %v452_v14 }
 0x3ff   :  { %v558_v15 = vpop.f32.mrf.mxu0 }
 0x400   :  { %v559_v16 = vadd.f32 %v604_v0, %v558_v15 }
 0x401   :  { %v735_v17 = vpop.f32.mrf.mxu0 }
 0x402   :  { %566 = vst.msk [vmem:[%s948_s7] sm:$0xff] %vm565_vm3, %v559_v16 }
 0x403   :  { %v561_v18 = vpop.f32.mrf.mxu0 }
 0x404   :  { %v562_v19 = vadd.f32 %v604_v0, %v561_v18 }
 0x405   :  { %v736_v20 = vpop.f32.mrf.mxu0 }
 0x406   :  { %567 = vst.msk [vmem:[%s948_s7 + $0x8] sm:$0xff] %vm565_vm3, %v562_v19 }
 0x407   :  { %572 = vsyncpa [#allocation3], 1 }

// kernel: tpu_custom_call.1
= control target key start
LH: loop header
LB: loop body
LE: loop exit
PB: predicated region body
PF: predicated region fallthrough
CT: control target
= control target key end

     0   :  { %12 = vsyncpa [#allocation3], 0  ;;  %s796_s24 = smov [#allocation2]   ;;  %s941_s0 = inlined_call_operand.vmem [shape: f32[16,4], index: 0, kind: input, shape index: {}]   ;;  %s942_s1 = inlined_call_operand.vmem [shape: bf16[4,128], index: 1, kind: input, shape index: {}]   ;;  %s943_s2 = inlined_call_operand.vmem [shape: f32[1,128], index: 2, kind: input, shape index: {}]   ;;  %s944_s3 = inlined_call_operand.hbm [shape: bf16[3,128,128], index: 3, kind: input, shape index: {}]   ;;  %s945_s4 = inlined_call_operand.vmem [shape: f32[3,1,128], index: 4, kind: input, shape index: {}]   ;;  %s946_s5 = inlined_call_operand.vmem [shape: bf16[128,3], index: 5, kind: input, shape index: {}]   ;;  %s947_s6 = inlined_call_operand.vmem [shape: f32[1,3], index: 6, kind: input, shape index: {}]   ;;  %s948_s7 = inlined_call_operand.vmem [shape: f32[16,3], index: 7, kind: output, shape index: {}]  }
   0x1   :  { %s24_s25 = sshll.u32 %s796_s24, 4  ;;  %s25_s25 = int_to_ptr.vmem [resolvable:$true] %s24_s25 }
   0x2   :  { %s782_s26 = scalar_lea.vmem %s25_s25, 3072  ;;  %p787_p1 = scmp.lt.s32.totalorder %s25_s25, %s25_s25 }
   0x3   :  { %p783_p0 = scmp.ne.s32.totalorder %s25_s25, %s782_s26  ;;  %p788_p2 = scmp.lt.s32.totalorder %s782_s26, %s782_s26 }
   0x5   :  { %p789_p3 = por %p788_p2, %p787_p1 }
   0x7   :  { %p790_p4 = pnand %p789_p3, %p783_p0 }
   0x9   :  { %793 = shalt.err (!%p790_p4)
}
   0xa   :  { %s797_s27 = smov 64   ;;  %s798_s28 = smov 4  }
   0xb   :  { %30 = dma.hbm_to_vmem [thread:$0]  %s944_s3, 3072, %s25_s25, [#allocation3], %s797_s27, %s797_s27, %s798_s28  }
   0xc   :  { %794 = dma.done.wait [#allocation3], 3072  }
   0xd   :  { %795 = vsyncadd [#allocation3], 4294964224  ;;  %v799_v0 = vmov 0.0   ;;  %vm800_vm0 = vmmov 0   ;;  %vm56_vm1 = vcmask 1041408   ;;  %v41_v2 = vld [vmem:[%s941_s0] sm:$0xff] }
   0xe   :  { %651 = vmatprep.subr.bf16.mxu0 %v799_v0  ;;  %653 = vmatprep.mubr.msk.bf16.mxu0 %vm800_vm0, %v799_v0  ;;  %v44_v1 = vld [vmem:[%s942_s1] sm:$0x3]  ;;  %v42_v3 = vld [vmem:[%s941_s0 + $0x8] sm:$0xff]  ;;  %v742_v6 = vld [vmem:[#allocation2 + $0x38] sm:$0xff]   ;;  %vm52_vm2 = vcmask 31744   ;;  %vm565_vm3 = vcmask 23552  }
   0xf   :  { %657 = vmatprep.subr.bf16.mxu1 %v799_v0  ;;  %673 = vmatprep.mubr.msk.bf16.mxu1 %vm800_vm0, %v799_v0  ;;  %v58_v4 = vsel %vm56_vm1, %v44_v1, 0  ;;  %v43_v5 = vpack.c.bf16 %v42_v3, %v41_v2  ;;  %v743_v7 = vld [vmem:[#allocation2 + $0x30] sm:$0xff]   ;;  %v744_v8 = vld [vmem:[#allocation2 + $0x28] sm:$0xff]   ;;  %v745_v9 = vld [vmem:[#allocation2 + $0x20] sm:$0xff]  }
  0x10   :  { %652 = vmatpush3.bf16.msra.mxu0 %v58_v4  ;;  %658 = vmatpush3.bf16.msra.mxu1 %v742_v6  ;;  %v746_v10 = vld [vmem:[#allocation2 + $0x18] sm:$0xff]   ;;  %v747_v11 = vld [vmem:[#allocation2 + $0x10] sm:$0xff]   ;;  %v748_v12 = vld [vmem:[#allocation2 + $0x8] sm:$0xff]  }
  0x11   :  { %677 = vmatprep.subr.bf16.mxu0 %v799_v0  ;;  %659 = vmatprep.subr.bf16.mxu1 %v799_v0  ;;  %v749_v13 = vld [vmem:[#allocation2] sm:$0xff]   ;;  %v750_v14 = vld [vmem:[#allocation2 + $0x78] sm:$0xff]   ;;  %v751_v15 = vld [vmem:[#allocation2 + $0x70] sm:$0xff]  }
  0x12   :  { %v752_v16 = vld [vmem:[#allocation2 + $0x68] sm:$0xff]   ;;  %v753_v17 = vld [vmem:[#allocation2 + $0x60] sm:$0xff]   ;;  %v754_v18 = vld [vmem:[#allocation2 + $0x58] sm:$0xff]  }
  0x13   :  { %654 = vmatmul.mubr.msk.bf16.vlgmr.msra.gmra.mxu0 %vm52_vm2, %v43_v5  ;;  %v573_v19 = vld [vmem:[%s943_s2] ss:$0 sm:$0xff]  ;;  %v755_v29 = vld [vmem:[#allocation2 + $0x50] sm:$0xff]   ;;  %v756_v30 = vld [vmem:[#allocation2 + $0x48] sm:$0xff]  }
  0x14   :  { %693 = vmatprep.mubr.msk.bf16.mxu0 %vm800_vm0, %v799_v0  ;;  %660 = vmatpush3.bf16.msra.mxu1 %v743_v7  ;;  %v757_v31 = vld [vmem:[#allocation2 + $0x40] sm:$0xff]   ;;  %v758_v32 = vld [vmem:[#allocation2 + $0xb8] sm:$0xff]   ;;  %v759_v33 = vld [vmem:[#allocation2 + $0xb0] sm:$0xff]  }
  0x15   :  { %661 = vmatprep.subr.bf16.mxu1 %v799_v0  ;;  %678 = vmatpush3.bf16.msra.mxu0 %v750_v14  ;;  %v760_v34 = vld [vmem:[#allocation2 + $0xa8] sm:$0xff]   ;;  %v761_v35 = vld [vmem:[#allocation2 + $0xa0] sm:$0xff]   ;;  %v762_v36 = vld [vmem:[#allocation2 + $0x98] sm:$0xff]  }
  0x16   :  { %679 = vmatprep.subr.bf16.mxu0 %v799_v0  ;;  %v575_v37 = vld [vmem:[%s945_s4] ss:$0 sm:$0xff]  ;;  %v763_v47 = vld [vmem:[#allocation2 + $0x90] sm:$0xff]   ;;  %v764_v48 = vld [vmem:[#allocation2 + $0x88] sm:$0xff]  }
  0x17   :  { %v765_v49 = vld [vmem:[#allocation2 + $0x80] sm:$0xff]   ;;  %v766_v50 = vld [vmem:[%s946_s5 + $0x38] sm:$0xff]   ;;  %v767_v51 = vld [vmem:[%s946_s5 + $0x30] sm:$0xff]  }
  0x18   :  { %662 = vmatpush3.bf16.msra.mxu1 %v744_v8  ;;  %v768_v52 = vld [vmem:[%s946_s5 + $0x28] sm:$0xff]   ;;  %v769_v53 = vld [vmem:[%s946_s5 + $0x20] sm:$0xff]   ;;  %v770_v54 = vld [vmem:[%s946_s5 + $0x18] sm:$0xff]  }
  0x19   :  { %663 = vmatprep.subr.bf16.mxu1 %v799_v0  ;;  %680 = vmatpush3.bf16.msra.mxu0 %v751_v15  ;;  %v585_v55 = vld [vmem:[%s945_s4 + $0x1] ss:$0 sm:$0xff]  ;;  %v771_v2 = vld [vmem:[%s946_s5 + $0x10] sm:$0xff]   ;;  %v772_v3 = vld [vmem:[%s946_s5 + $0x8] sm:$0xff]  }
  0x1a   :  { %681 = vmatprep.subr.bf16.mxu0 %v799_v0  ;;  %v773_v4 = vld [vmem:[%s946_s5] sm:$0xff]  }
  0x1b   :  { %v595_v5 = vld [vmem:[%s945_s4 + $0x2] ss:$0 sm:$0xff] }
  0x1c   :  { %664 = vmatpush3.bf16.msra.mxu1 %v745_v9 }
  0x1d   :  { %665 = vmatprep.subr.bf16.mxu1 %v799_v0  ;;  %682 = vmatpush3.bf16.msra.mxu0 %v752_v16 }
  0x1e   :  { %683 = vmatprep.subr.bf16.mxu0 %v799_v0 }
  0x20   :  { %666 = vmatpush3.bf16.msra.mxu1 %v746_v10 }
  0x21   :  { %667 = vmatprep.subr.bf16.mxu1 %v799_v0  ;;  %684 = vmatpush3.bf16.msra.mxu0 %v753_v17 }
  0x22   :  { %685 = vmatprep.subr.bf16.mxu0 %v799_v0 }
  0x24   :  { %668 = vmatpush3.bf16.msra.mxu1 %v747_v11 }
  0x25   :  { %669 = vmatprep.subr.bf16.mxu1 %v799_v0  ;;  %686 = vmatpush3.bf16.msra.mxu0 %v754_v18 }
  0x26   :  { %687 = vmatprep.subr.bf16.mxu0 %v799_v0 }
  0x28   :  { %670 = vmatpush3.bf16.msra.mxu1 %v748_v12 }
  0x29   :  { %671 = vmatprep.subr.bf16.mxu1 %v799_v0  ;;  %688 = vmatpush3.bf16.msra.mxu0 %v755_v29 }
  0x2a   :  { %689 = vmatprep.subr.bf16.mxu0 %v799_v0 }
  0x2c   :  { %672 = vmatpush3.bf16.msra.mxu1 %v749_v13 }
  0x2d   :  { %697 = vmatprep.subr.bf16.mxu1 %v799_v0  ;;  %690 = vmatpush3.bf16.msra.mxu0 %v756_v30 }
  0x2e   :  { %691 = vmatprep.subr.bf16.mxu0 %v799_v0 }
  0x31   :  { %692 = vmatpush3.bf16.msra.mxu0 %v757_v31 }
  0x32   :  { %717 = vmatprep.subr.bf16.mxu0 %v799_v0 }
  0xd3   :  { %v94_v20 = vpop.f32.mrf.mxu0 }
  0xd4   :  { %v95_v22 = vadd.f32 %v573_v19, %v94_v20 }
  0xd5   :  { %v655_v21 = vpop.f32.mrf.mxu0 }
  0xd6   :  { %v101_v26 = vmax.f32 %v95_v22, 0.0 }
  0xd7   :  { %v97_v23 = vpop.f32.mrf.mxu0 }
  0xd8   :  { %v98_v24 = vadd.f32 %v573_v19, %v97_v23 }
  0xd9   :  { %v656_v25 = vpop.f32.mrf.mxu0 }
  0xda   :  { %v102_v27 = vmax.f32 %v98_v24, 0.0 }
  0xdc   :  { %v103_v28 = vpack.c.bf16 %v102_v27, %v101_v26 }
  0xde   :  { %674 = vmatmul.mubr.bf16.vlgmr.msra.gmra.mxu1 %v103_v28 }
  0xdf   :  { %713 = vmatprep.mubr.msk.bf16.mxu1 %vm800_vm0, %v799_v0  ;;  %698 = vmatpush3.bf16.msra.mxu1 %v758_v32 }
  0xe0   :  { %699 = vmatprep.subr.bf16.mxu1 %v799_v0 }
  0xe3   :  { %700 = vmatpush3.bf16.msra.mxu1 %v759_v33 }
  0xe4   :  { %701 = vmatprep.subr.bf16.mxu1 %v799_v0 }
  0xe7   :  { %702 = vmatpush3.bf16.msra.mxu1 %v760_v34 }
  0xe8   :  { %703 = vmatprep.subr.bf16.mxu1 %v799_v0 }
  0xeb   :  { %704 = vmatpush3.bf16.msra.mxu1 %v761_v35 }
  0xec   :  { %705 = vmatprep.subr.bf16.mxu1 %v799_v0 }
  0xef   :  { %706 = vmatpush3.bf16.msra.mxu1 %v762_v36 }
  0xf0   :  { %707 = vmatprep.subr.bf16.mxu1 %v799_v0 }
  0xf3   :  { %708 = vmatpush3.bf16.msra.mxu1 %v763_v47 }
  0xf4   :  { %709 = vmatprep.subr.bf16.mxu1 %v799_v0 }
  0xf7   :  { %710 = vmatpush3.bf16.msra.mxu1 %v764_v48 }
  0xf8   :  { %711 = vmatprep.subr.bf16.mxu1 %v799_v0 }
  0xfb   :  { %712 = vmatpush3.bf16.msra.mxu1 %v765_v49 }
 0x19e   :  { %v209_v38 = vpop.f32.mrf.mxu1 }
 0x19f   :  { %v210_v40 = vadd.f32 %v575_v37, %v209_v38 }
 0x1a0   :  { %v675_v39 = vpop.f32.mrf.mxu1 }
 0x1a1   :  { %v216_v44 = vmax.f32 %v210_v40, 0.0 }
 0x1a2   :  { %v212_v41 = vpop.f32.mrf.mxu1 }
 0x1a3   :  { %v213_v42 = vadd.f32 %v575_v37, %v212_v41 }
 0x1a4   :  { %v676_v43 = vpop.f32.mrf.mxu1 }
 0x1a5   :  { %v217_v45 = vmax.f32 %v213_v42, 0.0 }
 0x1a7   :  { %v218_v46 = vpack.c.bf16 %v217_v45, %v216_v44 }
 0x1a9   :  { %694 = vmatmul.mubr.bf16.vlgmr.msra.gmra.mxu0 %v218_v46 }
 0x1aa   :  { %733 = vmatprep.mubr.msk.bf16.mxu0 %vm800_vm0, %v799_v0  ;;  %718 = vmatpush3.bf16.msra.mxu0 %v766_v50 }
 0x1ab   :  { %719 = vmatprep.subr.bf16.mxu0 %v799_v0 }
 0x1ae   :  { %720 = vmatpush3.bf16.msra.mxu0 %v767_v51 }
 0x1af   :  { %721 = vmatprep.subr.bf16.mxu0 %v799_v0 }
 0x1b2   :  { %722 = vmatpush3.bf16.msra.mxu0 %v768_v52 }
 0x1b3   :  { %723 = vmatprep.subr.bf16.mxu0 %v799_v0 }
 0x1b6   :  { %724 = vmatpush3.bf16.msra.mxu0 %v769_v53 }
 0x1b7   :  { %725 = vmatprep.subr.bf16.mxu0 %v799_v0 }
 0x1ba   :  { %726 = vmatpush3.bf16.msra.mxu0 %v770_v54 }
 0x1bb   :  { %727 = vmatprep.subr.bf16.mxu0 %v799_v0 }
 0x1be   :  { %728 = vmatpush3.bf16.msra.mxu0 %v771_v2 }
 0x1bf   :  { %729 = vmatprep.subr.bf16.mxu0 %v799_v0 }
 0x1c2   :  { %730 = vmatpush3.bf16.msra.mxu0 %v772_v3 }
 0x1c3   :  { %731 = vmatprep.subr.bf16.mxu0 %v799_v0  ;;  %v604_v0 = vld [vmem:[%s947_s6] ss:$0 sm:$0xff] }
 0x1c6   :  { %732 = vmatpush3.bf16.msra.mxu0 %v773_v4 }
 0x269   :  { %v326_v56 = vpop.f32.mrf.mxu0 }
 0x26a   :  { %v327_v58 = vadd.f32 %v585_v55, %v326_v56 }
 0x26b   :  { %v695_v57 = vpop.f32.mrf.mxu0 }
 0x26c   :  { %v333_v62 = vmax.f32 %v327_v58, 0.0 }
 0x26d   :  { %v329_v59 = vpop.f32.mrf.mxu0 }
 0x26e   :  { %v330_v60 = vadd.f32 %v585_v55, %v329_v59 }
 0x26f   :  { %v696_v61 = vpop.f32.mrf.mxu0 }
 0x270   :  { %v334_v63 = vmax.f32 %v330_v60, 0.0 }
 0x272   :  { %v335_v1 = vpack.c.bf16 %v334_v63, %v333_v62 }
 0x274   :  { %714 = vmatmul.mubr.bf16.vlgmr.msra.gmra.mxu1 %v335_v1 }
 0x334   :  { %v443_v6 = vpop.f32.mrf.mxu1 }
 0x335   :  { %v444_v8 = vadd.f32 %v595_v5, %v443_v6 }
 0x336   :  { %v715_v7 = vpop.f32.mrf.mxu1 }
 0x337   :  { %v450_v12 = vmax.f32 %v444_v8, 0.0 }
 0x338   :  { %v446_v9 = vpop.f32.mrf.mxu1 }
 0x339   :  { %v447_v10 = vadd.f32 %v595_v5, %v446_v9 }
 0x33a   :  { %v716_v11 = vpop.f32.mrf.mxu1 }
 0x33b   :  { %v451_v13 = vmax.f32 %v447_v10, 0.0 }
 0x33d   :  { %v452_v14 = vpack.c.bf16 %v451_v13, %v450_v12 }
 0x33f   :  { %734 = vmatmul.mubr.bf16.vlgmr.msra.gmra.mxu0 %v452_v14 }
 0x3ff   :  { %v558_v15 = vpop.f32.mrf.mxu0 }
 0x400   :  { %v559_v16 = vadd.f32 %v604_v0, %v558_v15 }
 0x401   :  { %v735_v17 = vpop.f32.mrf.mxu0 }
 0x402   :  { %566 = vst.msk [vmem:[%s948_s7] sm:$0xff] %vm565_vm3, %v559_v16 }
 0x403   :  { %v561_v18 = vpop.f32.mrf.mxu0 }
 0x404   :  { %v562_v19 = vadd.f32 %v604_v0, %v561_v18 }
 0x405   :  { %v736_v20 = vpop.f32.mrf.mxu0 }
 0x406   :  { %567 = vst.msk [vmem:[%s948_s7 + $0x8] sm:$0xff] %vm565_vm3, %v562_v19 }
 0x407   :  { %572 = vsyncpa [#allocation3], 1 }

</bundles_post_ra>
